<compile_context>
chip_gen: v7x
topology: tpu7x:2x2x1
jax: 0.10.0
libtpu: 0.0.40
codegen_flags: <defaults>
</compile_context>

<pallas_src>
import jax
import jax.numpy as jnp
from jax.experimental import pallas as pl
from jax.experimental.pallas import tpu as pltpu


def _mlp_kernel(x_ref, w1_ref, b1_ref, w2_ref, b2_ref, w3_ref, b3_ref, o_ref):
    # Layer 1: Linear + Sigmoid
    h = jnp.dot(x_ref[...], w1_ref[...], preferred_element_type=jnp.float32)
    h = jax.nn.sigmoid(h + b1_ref[...])
    # Layer 2: Linear + Sigmoid
    h = jnp.dot(h, w2_ref[...], preferred_element_type=jnp.float32)
    h = jax.nn.sigmoid(h + b2_ref[...])
    # Output layer: Linear (no activation)
    out = jnp.dot(h, w3_ref[...], preferred_element_type=jnp.float32) + b3_ref[...]
    o_ref[...] = out.astype(o_ref.dtype)


def _pad_to(n, m=128):
    return ((n + m - 1) // m) * m


def _pad2(a, rows, cols):
    r, c = a.shape
    if r == rows and c == cols:
        return a
    return jnp.pad(a, ((0, rows - r), (0, cols - c)))


def label_ranking_forward(x, params, *, max_tile_b=512):
    """Fused forward pass of LabelRankingModel via one pallas_call.

    x: [B, input_dim] float32
    params: dict with w1 [D, H1], b1 [1, H1], w2 [H1, H2], b2 [1, H2],
            w3 [H2, O], b3 [1, O]   (weights already transposed vs. torch)
    """
    B, D = x.shape
    H1 = params["w1"].shape[1]
    H2 = params["w2"].shape[1]
    O = params["w3"].shape[1]

    # Pad every feature dimension to a multiple of 128 lanes.  Zero padding is
    # inert: padded x columns hit zero weight rows, padded hidden columns
    # (sigmoid(0)=0.5) hit zero weight rows of the next layer, padded output
    # columns are exactly zero and sliced off below.
    Dp, H1p, H2p, Op = _pad_to(D), _pad_to(H1), _pad_to(H2), _pad_to(O)

    x_p = _pad2(x, B, Dp)
    w1_p = _pad2(params["w1"], Dp, H1p)
    b1_p = _pad2(params["b1"], 1, H1p)
    w2_p = _pad2(params["w2"], H1p, H2p)
    b2_p = _pad2(params["b2"], 1, H2p)
    w3_p = _pad2(params["w3"], H2p, Op)
    b3_p = _pad2(params["b3"], 1, Op)

    # Batch tiling: one big tile if the batch is small, otherwise max_tile_b
    # row tiles.  Non-divisible B relies on Pallas edge masking (block_shape
    # equal to the full array dim is also always legal).
    tile_b = B if B <= max_tile_b else max_tile_b
    grid = (pl.cdiv(B, tile_b),)

    def const_spec(shape):
        # Same block index every grid step -> weights stay resident in VMEM.
        return pl.BlockSpec(shape, lambda i: (0, 0))

    out_p = pl.pallas_call(
        _mlp_kernel,
        out_shape=jax.ShapeDtypeStruct((B, Op), x.dtype),
        grid=grid,
        in_specs=[
            pl.BlockSpec((tile_b, Dp), lambda i: (i, 0)),  # x tile
            const_spec((Dp, H1p)),
            const_spec((1, H1p)),
            const_spec((H1p, H2p)),
            const_spec((1, H2p)),
            const_spec((H2p, Op)),
            const_spec((1, Op)),
        ],
        out_specs=pl.BlockSpec((tile_b, Op), lambda i: (i, 0)),
        compiler_params=pltpu.CompilerParams(
            dimension_semantics=("parallel",)
        ),
    )(x_p, w1_p, b1_p, w2_p, b2_p, w3_p, b3_p)

    return out_p[:, :O]


def init_params(key, input_dim, hidden_dims, output_dim):
    """Deterministic PyTorch-style init (nn.Linear default).

    nn.Linear default: U(-1/sqrt(in), 1/sqrt(in)) for both weight and bias.
    Weights stored transposed: [in_features, out_features].
    """
    dims = [input_dim] + list(hidden_dims) + [output_dim]
    params = {}
    for li in range(len(dims) - 1):
        fan_in, fan_out = dims[li], dims[li + 1]
        key, kw, kb = jax.random.split(key, 3)
        bound = 1.0 / jnp.sqrt(fan_in)
        w = jax.random.uniform(kw, (fan_in, fan_out), jnp.float32, -bound, bound)
        b = jax.random.uniform(kb, (1, fan_out), jnp.float32, -bound, bound)
        params[f"w{li + 1}"] = w
        params[f"b{li + 1}"] = b
    return params


def reference_forward(x, params):
    h = jax.nn.sigmoid(x @ params["w1"] + params["b1"])
    h = jax.nn.sigmoid(h @ params["w2"] + params["b2"])
    return h @ params["w3"] + params["b3"]


if __name__ == "__main__":
    key = jax.random.PRNGKey(0)

    # Small shapes consistent with LabelRankingModel(input_dim, hidden_dims, output_dim)
    batch = 16
    input_dim = 32
    hidden_dims = [64, 32]
    output_dim = 8

    key, kx = jax.random.split(key)
    x = jax.random.normal(kx, (batch, input_dim), jnp.float32)
    params = init_params(key, input_dim, hidden_dims, output_dim)

    # Single-tile path (grid = (1,)).
    out = jax.block_until_ready(label_ranking_forward(x, params))
    ref = reference_forward(x, params)
    assert out.shape == (batch, output_dim)
    assert jnp.allclose(out, ref, atol=1e-5, rtol=1e-5)

    # Multi-tile path (grid > 1, batch divisible by the tile).
    key, kx2 = jax.random.split(key)
    x2 = jax.random.normal(kx2, (48, input_dim), jnp.float32)
    out2 = jax.block_until_ready(label_ranking_forward(x2, params, max_tile_b=16))
    assert jnp.allclose(out2, reference_forward(x2, params), atol=1e-5, rtol=1e-5)

    # Multi-tile path with a masked tail block (batch not divisible by tile).
    key, kx3 = jax.random.split(key)
    x3 = jax.random.normal(kx3, (40, input_dim), jnp.float32)
    out3 = jax.block_until_ready(label_ranking_forward(x3, params, max_tile_b=16))
    assert out3.shape == (40, output_dim)
    assert jnp.allclose(out3, reference_forward(x3, params), atol=1e-5, rtol=1e-5)

    print("KERNEL_OK")
</pallas_src>

<mosaic_0001>
module attributes {stable_mosaic.version = 11 : i64} {
  func.func @_mlp_kernel(%arg0: i32, %arg1: memref<16x128xf32, #tpu.memory_space<vmem>>, %arg2: memref<128x128xf32, #tpu.memory_space<vmem>>, %arg3: memref<1x128xf32, #tpu.memory_space<vmem>>, %arg4: memref<128x128xf32, #tpu.memory_space<vmem>>, %arg5: memref<1x128xf32, #tpu.memory_space<vmem>>, %arg6: memref<128x128xf32, #tpu.memory_space<vmem>>, %arg7: memref<1x128xf32, #tpu.memory_space<vmem>>, %arg8: memref<16x128xf32, #tpu.memory_space<vmem>>) attributes {dimension_semantics = [#tpu.dimension_semantics<parallel>], iteration_bounds = array<i64: 1>, scalar_prefetch = 0 : i64, scratch_operands = 0 : i64, tpu.core_type = #tpu.core_type<tc>, window_params = [{transform_indices = @transform_0, window_bounds = array<i64: 16, 128>}, {pipeline_mode = #tpu.pipeline_mode<synchronous>, transform_indices = @transform_1, window_bounds = array<i64: 128, 128>}, {pipeline_mode = #tpu.pipeline_mode<synchronous>, transform_indices = @transform_2, window_bounds = array<i64: 1, 128>}, {pipeline_mode = #tpu.pipeline_mode<synchronous>, transform_indices = @transform_3, window_bounds = array<i64: 128, 128>}, {pipeline_mode = #tpu.pipeline_mode<synchronous>, transform_indices = @transform_4, window_bounds = array<i64: 1, 128>}, {pipeline_mode = #tpu.pipeline_mode<synchronous>, transform_indices = @transform_5, window_bounds = array<i64: 128, 128>}, {pipeline_mode = #tpu.pipeline_mode<synchronous>, transform_indices = @transform_6, window_bounds = array<i64: 1, 128>}, {transform_indices = @transform_7, window_bounds = array<i64: 16, 128>}]} {
    %c0 = arith.constant 0 : index
    %c0_0 = arith.constant 0 : index
    %0 = vector.load %arg1[%c0, %c0_0] : memref<16x128xf32, #tpu.memory_space<vmem>>, vector<16x128xf32>
    %c0_1 = arith.constant 0 : index
    %c0_2 = arith.constant 0 : index
    %1 = vector.load %arg2[%c0_1, %c0_2] : memref<128x128xf32, #tpu.memory_space<vmem>>, vector<128x128xf32>
    %cst = arith.constant dense<0.000000e+00> : vector<16x128xf32>
    %2 = tpu.matmul %0, %1, %cst {dimension_numbers = #tpu.dot_dimension_numbers<[1], [0], [0], [1], [0, 0, 1, 1], [], []>} : vector<16x128xf32>, vector<128x128xf32>, vector<16x128xf32> -> vector<16x128xf32>
    %c0_3 = arith.constant 0 : index
    %c0_4 = arith.constant 0 : index
    %3 = vector.load %arg3[%c0_3, %c0_4] : memref<1x128xf32, #tpu.memory_space<vmem>>, vector<1x128xf32>
    %4 = vector.broadcast %3 : vector<1x128xf32> to vector<16x128xf32>
    %5 = arith.addf %2, %4 : vector<16x128xf32>
    %6 = arith.negf %5 : vector<16x128xf32>
    %7 = math.exp %6 : vector<16x128xf32>
    %cst_5 = arith.constant 1.000000e+00 : f32
    %8 = vector.broadcast %cst_5 : f32 to vector<16x128xf32>
    %9 = arith.addf %8, %7 : vector<16x128xf32>
    %10 = arith.divf %8, %9 : vector<16x128xf32>
    %c0_6 = arith.constant 0 : index
    %c0_7 = arith.constant 0 : index
    %11 = vector.load %arg4[%c0_6, %c0_7] : memref<128x128xf32, #tpu.memory_space<vmem>>, vector<128x128xf32>
    %cst_8 = arith.constant dense<0.000000e+00> : vector<16x128xf32>
    %12 = tpu.matmul %10, %11, %cst_8 {dimension_numbers = #tpu.dot_dimension_numbers<[1], [0], [0], [1], [0, 0, 1, 1], [], []>} : vector<16x128xf32>, vector<128x128xf32>, vector<16x128xf32> -> vector<16x128xf32>
    %c0_9 = arith.constant 0 : index
    %c0_10 = arith.constant 0 : index
    %13 = vector.load %arg5[%c0_9, %c0_10] : memref<1x128xf32, #tpu.memory_space<vmem>>, vector<1x128xf32>
    %14 = vector.broadcast %13 : vector<1x128xf32> to vector<16x128xf32>
    %15 = arith.addf %12, %14 : vector<16x128xf32>
    %16 = arith.negf %15 : vector<16x128xf32>
    %17 = math.exp %16 : vector<16x128xf32>
    %cst_11 = arith.constant 1.000000e+00 : f32
    %18 = vector.broadcast %cst_11 : f32 to vector<16x128xf32>
    %19 = arith.addf %18, %17 : vector<16x128xf32>
    %20 = arith.divf %18, %19 : vector<16x128xf32>
    %c0_12 = arith.constant 0 : index
    %c0_13 = arith.constant 0 : index
    %21 = vector.load %arg6[%c0_12, %c0_13] : memref<128x128xf32, #tpu.memory_space<vmem>>, vector<128x128xf32>
    %cst_14 = arith.constant dense<0.000000e+00> : vector<16x128xf32>
    %22 = tpu.matmul %20, %21, %cst_14 {dimension_numbers = #tpu.dot_dimension_numbers<[1], [0], [0], [1], [0, 0, 1, 1], [], []>} : vector<16x128xf32>, vector<128x128xf32>, vector<16x128xf32> -> vector<16x128xf32>
    %c0_15 = arith.constant 0 : index
    %c0_16 = arith.constant 0 : index
    %23 = vector.load %arg7[%c0_15, %c0_16] : memref<1x128xf32, #tpu.memory_space<vmem>>, vector<1x128xf32>
    %24 = vector.broadcast %23 : vector<1x128xf32> to vector<16x128xf32>
    %25 = arith.addf %22, %24 : vector<16x128xf32>
    %c0_17 = arith.constant 0 : index
    %c0_18 = arith.constant 0 : index
    %26 = vector.load %arg8[%c0_17, %c0_18] : memref<16x128xf32, #tpu.memory_space<vmem>>, vector<16x128xf32>
    tpu.vector_store %arg8[%c0_17, %c0_18], %25 {strides = array<i32>} : memref<16x128xf32, #tpu.memory_space<vmem>>, vector<16x128xf32>,
    return
  }
  func.func @transform_0(%arg0: i32) -> (i32, i32) {
    %c0_i32 = arith.constant 0 : i32
    %c0_i32_0 = arith.constant 0 : i32
    return %arg0, %c0_i32 : i32, i32
  }
  func.func @transform_1(%arg0: i32) -> (i32, i32) {
    %c0_i32 = arith.constant 0 : i32
    %c0_i32_0 = arith.constant 0 : i32
    %c0_i32_1 = arith.constant 0 : i32
    return %c0_i32, %c0_i32_0 : i32, i32
  }
  func.func @transform_2(%arg0: i32) -> (i32, i32) {
    %c0_i32 = arith.constant 0 : i32
    %c0_i32_0 = arith.constant 0 : i32
    %c0_i32_1 = arith.constant 0 : i32
    return %c0_i32, %c0_i32_0 : i32, i32
  }
  func.func @transform_3(%arg0: i32) -> (i32, i32) {
    %c0_i32 = arith.constant 0 : i32
    %c0_i32_0 = arith.constant 0 : i32
    %c0_i32_1 = arith.constant 0 : i32
    return %c0_i32, %c0_i32_0 : i32, i32
  }
  func.func @transform_4(%arg0: i32) -> (i32, i32) {
    %c0_i32 = arith.constant 0 : i32
    %c0_i32_0 = arith.constant 0 : i32
    %c0_i32_1 = arith.constant 0 : i32
    return %c0_i32, %c0_i32_0 : i32, i32
  }
  func.func @transform_5(%arg0: i32) -> (i32, i32) {
    %c0_i32 = arith.constant 0 : i32
    %c0_i32_0 = arith.constant 0 : i32
    %c0_i32_1 = arith.constant 0 : i32
    return %c0_i32, %c0_i32_0 : i32, i32
  }
  func.func @transform_6(%arg0: i32) -> (i32, i32) {
    %c0_i32 = arith.constant 0 : i32
    %c0_i32_0 = arith.constant 0 : i32
    %c0_i32_1 = arith.constant 0 : i32
    return %c0_i32, %c0_i32_0 : i32, i32
  }
  func.func @transform_7(%arg0: i32) -> (i32, i32) {
    %c0_i32 = arith.constant 0 : i32
    %c0_i32_0 = arith.constant 0 : i32
    return %arg0, %c0_i32 : i32, i32
  }
}

</mosaic_0001>

<bundles_post_ra>
// kernel: tpu_custom_call.1
= control target key start
LH: loop header
LB: loop body
LE: loop exit
PB: predicated region body
PF: predicated region fallthrough
CT: control target
= control target key end

     0   :  { %12 = vsyncpa [#allocation3], 0  ;;  %s971_s0 = inlined_call_operand.hbm [shape: f32[16,128], index: 0, kind: input, shape index: {}]   ;;  %s972_s1 = inlined_call_operand.hbm [shape: f32[128,128], index: 1, kind: input, shape index: {}]   ;;  %s973_s2 = inlined_call_operand.vmem [shape: f32[1,128], index: 2, kind: input, shape index: {}]   ;;  %s974_s3 = inlined_call_operand.hbm [shape: f32[128,128], index: 3, kind: input, shape index: {}]   ;;  %s975_s4 = inlined_call_operand.vmem [shape: f32[1,128], index: 4, kind: input, shape index: {}]   ;;  %s976_s5 = inlined_call_operand.hbm [shape: f32[128,128], index: 5, kind: input, shape index: {}]   ;;  %s977_s6 = inlined_call_operand.vmem [shape: f32[1,128], index: 6, kind: input, shape index: {}]   ;;  %s978_s7 = inlined_call_operand.hbm [shape: f32[16,128], index: 7, kind: output, shape index: {}]  }
   0x1   :  { %13 = vsyncpa [#allocation6], 0 }
   0x2   :  { %14 = vsyncpa [#allocation9], 0 }
   0x3   :  { %15 = vsyncpa [#allocation4], 0  ;;  %s826_s24 = smov [#allocation5]   ;;  %s827_s26 = smov [#allocation2]  }
   0x4   :  { %s33_s25 = sshll.u32 %s826_s24, 4  ;;  %s21_s27 = sshll.u32 %s827_s26, 4  ;;  %s34_s25 = int_to_ptr.vmem [resolvable:$true] %s33_s25  ;;  %s873_s27 = int_to_ptr.vmem [resolvable:$true] %s21_s27 }
   0x5   :  { %s708_s30 = scalar_lea.hbm %s972_s1, 2048 }
   0x6   :  { %p709_p0 = scmp.ne.s32.totalorder %s972_s1, %s708_s30  ;;  %p712_p1 = scmp.lt.u32.totalorder %s708_s30, %s972_s1 }
   0x8   :  { %p714_p2 = pnand %p712_p1, %p709_p0 }
   0xa   :  { %717 = shalt.err (!%p714_p2)
}
   0xb   :  { %s718_s12 = scalar_lea.vmem %s34_s25, 2048  ;;  %p723_p4 = scmp.lt.s32.totalorder %s34_s25, %s34_s25 }
   0xc   :  { %p719_p3 = scmp.ne.s32.totalorder %s34_s25, %s718_s12  ;;  %p724_p5 = scmp.lt.s32.totalorder %s718_s12, %s718_s12 }
   0xe   :  { %p725_p6 = por %p724_p5, %p723_p4 }
  0x10   :  { %p726_p7 = pnand %p725_p6, %p719_p3 }
  0x12   :  { %729 = shalt.err (!%p726_p7)
}
  0x13   :  { %s828_s13 = smov 128   ;;  %s829_s14 = smov 8  }
  0x14   :  { %39 = dma.hbm_to_vmem [thread:$0]  %s972_s1, 2048, %s34_s25, [#allocation6], %s828_s13, %s828_s13, %s829_s14  }
  0x15   :  { %s730_s19 = scalar_lea.hbm %s971_s0, 256 }
  0x16   :  { %p731_p8 = scmp.ne.s32.totalorder %s971_s0, %s730_s19  ;;  %p734_p9 = scmp.lt.u32.totalorder %s730_s19, %s971_s0 }
  0x18   :  { %p736_p10 = pnand %p734_p9, %p731_p8 }
  0x1a   :  { %739 = shalt.err (!%p736_p10)
}
  0x1b   :  { %s740_s24 = scalar_lea.vmem %s873_s27, 256  ;;  %p745_p12 = scmp.lt.s32.totalorder %s873_s27, %s873_s27 }
  0x1c   :  { %p741_p11 = scmp.ne.s32.totalorder %s873_s27, %s740_s24  ;;  %p746_p13 = scmp.lt.s32.totalorder %s740_s24, %s740_s24 }
  0x1e   :  { %p747_p0 = por %p746_p13, %p745_p12 }
  0x20   :  { %p748_p1 = pnand %p747_p0, %p741_p11 }
  0x22   :  { %751 = shalt.err (!%p748_p1)
}
  0x23   :  { %27 = dma.hbm_to_vmem [thread:$0]  %s971_s0, 256, %s873_s27, [#allocation3], %s828_s13, %s828_s13, %s829_s14  }
  0x24   :  { %s830_s26 = smov [#allocation7]   ;;  %s831_s29 = smov [#allocation8]  }
  0x25   :  { %s47_s28 = sshll.u32 %s830_s26, 4  ;;  %s61_s30 = sshll.u32 %s831_s29, 4  ;;  %s48_s28 = int_to_ptr.vmem [resolvable:$true] %s47_s28  ;;  %s910_s30 = int_to_ptr.vmem [resolvable:$true] %s61_s30 }
  0x26   :  { %s752_s10 = scalar_lea.hbm %s974_s3, 2048 }
  0x27   :  { %p753_p2 = scmp.ne.s32.totalorder %s974_s3, %s752_s10  ;;  %p756_p3 = scmp.lt.u32.totalorder %s752_s10, %s974_s3 }
  0x29   :  { %p758_p4 = pnand %p756_p3, %p753_p2 }
  0x2b   :  { %761 = shalt.err (!%p758_p4)
}
  0x2c   :  { %s762_s0 = scalar_lea.vmem %s48_s28, 2048  ;;  %p767_p6 = scmp.lt.s32.totalorder %s48_s28, %s48_s28 }
  0x2d   :  { %p763_p5 = scmp.ne.s32.totalorder %s48_s28, %s762_s0  ;;  %p768_p7 = scmp.lt.s32.totalorder %s762_s0, %s762_s0 }
  0x2f   :  { %p769_p8 = por %p768_p7, %p767_p6 }
  0x31   :  { %p770_p9 = pnand %p769_p8, %p763_p5 }
  0x33   :  { %773 = shalt.err (!%p770_p9)
}
  0x34   :  { %53 = dma.hbm_to_vmem [thread:$0]  %s974_s3, 2048, %s48_s28, [#allocation6], %s828_s13, %s828_s13, %s829_s14  }
  0x35   :  { %s774_s20 = scalar_lea.hbm %s976_s5, 2048 }
  0x36   :  { %p775_p10 = scmp.ne.s32.totalorder %s976_s5, %s774_s20  ;;  %p778_p11 = scmp.lt.u32.totalorder %s774_s20, %s976_s5 }
  0x38   :  { %p780_p12 = pnand %p778_p11, %p775_p10 }
  0x3a   :  { %783 = shalt.err (!%p780_p12)
}
  0x3b   :  { %s784_s1 = scalar_lea.vmem %s910_s30, 2048  ;;  %p789_p0 = scmp.lt.s32.totalorder %s910_s30, %s910_s30 }
  0x3c   :  { %p785_p13 = scmp.ne.s32.totalorder %s910_s30, %s784_s1  ;;  %p790_p1 = scmp.lt.s32.totalorder %s784_s1, %s784_s1 }
  0x3e   :  { %p791_p2 = por %p790_p1, %p789_p0 }
  0x40   :  { %p792_p3 = pnand %p791_p2, %p785_p13 }
  0x42   :  { %795 = shalt.err (!%p792_p3)
}
  0x43   :  { %67 = dma.hbm_to_vmem [thread:$0]  %s976_s5, 2048, %s910_s30, [#allocation9], %s828_s13, %s828_s13, %s829_s14  }
  0x44   :  { %818 = dma.done.wait [#allocation3], 256  }
  0x45   :  { %819 = vsyncadd [#allocation3], 4294967040 }
  0x46   :  { %820 = dma.done.wait [#allocation6], 4096  }
  0x47   :  { %821 = vsyncadd [#allocation6], 4294963200 }
  0x48   :  { %822 = dma.done.wait [#allocation9], 2048  }
  0x49   :  { %823 = vsyncadd [#allocation9], 4294965248  ;;  %v84_v0 = vld [vmem:[#allocation5] sm:$0xff]  ;;  %v85_v1 = vld [vmem:[#allocation5 + $0x8] sm:$0xff]  ;;  %s832_s30 = smov [#allocation10]  }
  0x4a   :  { %v86_v2 = vld [vmem:[#allocation5 + $0x10] sm:$0xff]  ;;  %v589_v3 = vpack.c.bf16 %v85_v1, %v84_v0  ;;  %v87_v4 = vld [vmem:[#allocation5 + $0x18] sm:$0xff]  ;;  %v88_v6 = vld [vmem:[#allocation5 + $0x20] sm:$0xff]  ;;  %s409_s8 = sshll.u32 %s832_s30, 4  ;;  %s410_s8 = int_to_ptr.vmem [resolvable:$true] %s409_s8 }
  0x4b   :  { %v593_v5 = vpack.c.bf16 %v87_v4, %v86_v2  ;;  %v89_v7 = vld [vmem:[#allocation5 + $0x28] sm:$0xff]  ;;  %v90_v9 = vld [vmem:[#allocation5 + $0x30] sm:$0xff]  ;;  %v91_v11 = vld [vmem:[#allocation5 + $0x38] sm:$0xff]  ;;  %s796_s9 = scalar_lea.vmem %s410_s8, 256  ;;  %p801_p5 = scmp.lt.s32.totalorder %s410_s8, %s410_s8 }
  0x4c   :  { %590 = vmatprep.subr.bf16.mxu0 %v589_v3  ;;  %v597_v8 = vpack.c.bf16 %v89_v7, %v88_v6  ;;  %v82_v10 = vld [vmem:[#allocation2] sm:$0xff]  ;;  %v194_v12 = vld [vmem:[#allocation7] sm:$0xff]  ;;  %v195_v13 = vld [vmem:[#allocation7 + $0x8] sm:$0xff]  ;;  %v601_v15 = vpack.c.bf16 %v91_v11, %v90_v9  ;;  %p797_p4 = scmp.ne.s32.totalorder %s410_s8, %s796_s9  ;;  %p802_p6 = scmp.lt.s32.totalorder %s796_s9, %s796_s9 }
  0x4d   :  { %592 = vmatpush3.bf16.msra.mxu0 %v589_v3  ;;  %516 = vmatprep.mubr.f32.mxu0 %v82_v10  ;;  %v621_v14 = vpack.c.bf16 %v195_v13, %v194_v12  ;;  %v92_v16 = vld [vmem:[#allocation5 + $0x40] sm:$0xff]  ;;  %v93_v17 = vld [vmem:[#allocation5 + $0x48] sm:$0xff]  ;;  %v94_v19 = vld [vmem:[#allocation5 + $0x50] sm:$0xff] }
  0x4e   :  { %594 = vmatprep.subr.bf16.mxu0 %v593_v5  ;;  %v605_v18 = vpack.c.bf16 %v93_v17, %v92_v16  ;;  %v95_v20 = vld [vmem:[#allocation5 + $0x58] sm:$0xff]  ;;  %v96_v22 = vld [vmem:[#allocation5 + $0x60] sm:$0xff]  ;;  %v97_v23 = vld [vmem:[#allocation5 + $0x68] sm:$0xff]  ;;  %p803_p7 = por %p802_p6, %p801_p5 }
  0x4f   :  { %622 = vmatprep.subr.bf16.mxu1 %v621_v14  ;;  %v609_v21 = vpack.c.bf16 %v95_v20, %v94_v19  ;;  %v613_v24 = vpack.c.bf16 %v97_v23, %v96_v22  ;;  %v98_v25 = vld [vmem:[#allocation5 + $0x70] sm:$0xff]  ;;  %v99_v26 = vld [vmem:[#allocation5 + $0x78] sm:$0xff]  ;;  %v198_v32 = vld [vmem:[#allocation7 + $0x20] sm:$0xff] }
  0x50   :  { %624 = vmatpush3.bf16.msra.mxu1 %v621_v14  ;;  %v617_v27 = vpack.c.bf16 %v99_v26, %v98_v25  ;;  %v83_v28 = vld [vmem:[#allocation2 + $0x8] sm:$0xff]  ;;  %v196_v29 = vld [vmem:[#allocation7 + $0x10] sm:$0xff]  ;;  %v199_v33 = vld [vmem:[#allocation7 + $0x28] sm:$0xff]  ;;  %p804_p8 = pnand %p803_p7, %p797_p4 }
  0x51   :  { %596 = vmatpush3.bf16.msra.mxu0 %v593_v5  ;;  %v197_v30 = vld [vmem:[#allocation7 + $0x18] sm:$0xff]  ;;  %v629_v34 = vpack.c.bf16 %v199_v33, %v198_v32  ;;  %v200_v35 = vld [vmem:[#allocation7 + $0x30] sm:$0xff]  ;;  %v202_v38 = vld [vmem:[#allocation7 + $0x40] sm:$0xff] }
  0x52   :  { %598 = vmatprep.subr.bf16.mxu0 %v597_v8  ;;  %v625_v31 = vpack.c.bf16 %v197_v30, %v196_v29  ;;  %v201_v36 = vld [vmem:[#allocation7 + $0x38] sm:$0xff]  ;;  %v203_v39 = vld [vmem:[#allocation7 + $0x48] sm:$0xff]  ;;  %v204_v41 = vld [vmem:[#allocation7 + $0x50] sm:$0xff] }
  0x53   :  { %v633_v37 = vpack.c.bf16 %v201_v36, %v200_v35  ;;  %v637_v40 = vpack.c.bf16 %v203_v39, %v202_v38  ;;  %v205_v42 = vld [vmem:[#allocation7 + $0x58] sm:$0xff]  ;;  %v206_v44 = vld [vmem:[#allocation7 + $0x60] sm:$0xff]  ;;  %v207_v45 = vld [vmem:[#allocation7 + $0x68] sm:$0xff] }
  0x54   :  { %626 = vmatprep.subr.bf16.mxu1 %v625_v31  ;;  %v641_v43 = vpack.c.bf16 %v205_v42, %v204_v41  ;;  %v208_v46 = vld [vmem:[#allocation7 + $0x70] sm:$0xff]  ;;  %v645_v47 = vpack.c.bf16 %v207_v45, %v206_v44  ;;  %v209_v48 = vld [vmem:[#allocation7 + $0x78] sm:$0xff]  ;;  %v304_v50 = vld [vmem:[#allocation8] sm:$0xff] }
  0x55   :  { %600 = vmatpush3.bf16.msra.mxu0 %v597_v8  ;;  %628 = vmatpush3.bf16.msra.mxu1 %v625_v31  ;;  %v649_v49 = vpack.c.bf16 %v209_v48, %v208_v46  ;;  %v305_v51 = vld [vmem:[#allocation8 + $0x8] sm:$0xff]  ;;  %v423_v53 = vld [vmem:[%s973_s2] ss:$0 sm:$0xff]  ;;  %v307_v3 = vld [vmem:[#allocation8 + $0x18] sm:$0xff] }
  0x56   :  { %602 = vmatprep.subr.bf16.mxu0 %v601_v15  ;;  %630 = vmatprep.subr.bf16.mxu1 %v629_v34  ;;  %v653_v52 = vpack.c.bf16 %v305_v51, %v304_v50  ;;  %v306_v2 = vld [vmem:[#allocation8 + $0x10] sm:$0xff]  ;;  %v308_v5 = vld [vmem:[#allocation8 + $0x20] sm:$0xff]  ;;  %v309_v6 = vld [vmem:[#allocation8 + $0x28] sm:$0xff] }
  0x57   :  { %v657_v4 = vpack.c.bf16 %v307_v3, %v306_v2  ;;  %v661_v7 = vpack.c.bf16 %v309_v6, %v308_v5  ;;  %v310_v8 = vld [vmem:[#allocation8 + $0x30] sm:$0xff]  ;;  %v311_v9 = vld [vmem:[#allocation8 + $0x38] sm:$0xff]  ;;  %v312_v11 = vld [vmem:[#allocation8 + $0x40] sm:$0xff] }
  0x58   :  { %v665_v10 = vpack.c.bf16 %v311_v9, %v310_v8  ;;  %v313_v12 = vld [vmem:[#allocation8 + $0x48] sm:$0xff]  ;;  %v314_v14 = vld [vmem:[#allocation8 + $0x50] sm:$0xff]  ;;  %v316_v17 = vld [vmem:[#allocation8 + $0x60] sm:$0xff] }
  0x59   :  { %604 = vmatpush3.bf16.msra.mxu0 %v601_v15  ;;  %632 = vmatpush3.bf16.msra.mxu1 %v629_v34  ;;  %v669_v13 = vpack.c.bf16 %v313_v12, %v312_v11  ;;  %v315_v15 = vld [vmem:[#allocation8 + $0x58] sm:$0xff]  ;;  %v318_v19 = vld [vmem:[#allocation8 + $0x70] sm:$0xff] }
  0x5a   :  { %606 = vmatprep.subr.bf16.mxu0 %v605_v18  ;;  %634 = vmatprep.subr.bf16.mxu1 %v633_v37  ;;  %v673_v16 = vpack.c.bf16 %v315_v15, %v314_v14  ;;  %v426_v23 = vld [vmem:[%s975_s4] ss:$0 sm:$0xff] }
  0x5b   :  { %v429_v36 = vld [vmem:[%s977_s6] ss:$0 sm:$0xff] }
  0x5d   :  { %608 = vmatpush3.bf16.msra.mxu0 %v605_v18  ;;  %636 = vmatpush3.bf16.msra.mxu1 %v633_v37  ;;  %v317_v18 = vld [vmem:[#allocation8 + $0x68] sm:$0xff] }
  0x5e   :  { %610 = vmatprep.subr.bf16.mxu0 %v609_v21  ;;  %638 = vmatprep.subr.bf16.mxu1 %v637_v40  ;;  %v677_v20 = vpack.c.bf16 %v317_v18, %v316_v17 }
  0x61   :  { %612 = vmatpush3.bf16.msra.mxu0 %v609_v21  ;;  %640 = vmatpush3.bf16.msra.mxu1 %v637_v40  ;;  %v319_v21 = vld [vmem:[#allocation8 + $0x78] sm:$0xff] }
  0x62   :  { %614 = vmatprep.subr.bf16.mxu0 %v613_v24  ;;  %642 = vmatprep.subr.bf16.mxu1 %v641_v43  ;;  %v681_v22 = vpack.c.bf16 %v319_v21, %v318_v19 }
  0x65   :  { %616 = vmatpush3.bf16.msra.mxu0 %v613_v24  ;;  %644 = vmatpush3.bf16.msra.mxu1 %v641_v43 }
  0x66   :  { %618 = vmatprep.subr.bf16.mxu0 %v617_v27  ;;  %646 = vmatprep.subr.bf16.mxu1 %v645_v47 }
  0x69   :  { %620 = vmatpush3.bf16.msra.mxu0 %v617_v27  ;;  %648 = vmatpush3.bf16.msra.mxu1 %v645_v47 }
  0x6a   :  { %650 = vmatprep.subr.bf16.mxu1 %v649_v49  ;;  %654 = vmatprep.subr.bf16.mxu0 %v653_v52 }
  0x6c   :  { %517 = vmatmul.mubr.f32.vlgmr.msra.gmra.mrb[0].mxu0 %v83_v28 }
  0x6d   :  { %652 = vmatpush3.bf16.msra.mxu1 %v649_v49  ;;  %656 = vmatpush3.bf16.msra.mxu0 %v653_v52 }
  0x6e   :  { %658 = vmatprep.subr.bf16.mxu0 %v657_v4 }
  0x71   :  { %660 = vmatpush3.bf16.msra.mxu0 %v657_v4 }
  0x72   :  { %662 = vmatprep.subr.bf16.mxu0 %v661_v7 }
  0x75   :  { %664 = vmatpush3.bf16.msra.mxu0 %v661_v7 }
  0x76   :  { %666 = vmatprep.subr.bf16.mxu0 %v665_v10 }
  0x79   :  { %668 = vmatpush3.bf16.msra.mxu0 %v665_v10 }
  0x7a   :  { %670 = vmatprep.subr.bf16.mxu0 %v669_v13 }
  0x7d   :  { %672 = vmatpush3.bf16.msra.mxu0 %v669_v13 }
  0x7e   :  { %674 = vmatprep.subr.bf16.mxu0 %v673_v16 }
  0x81   :  { %676 = vmatpush3.bf16.msra.mxu0 %v673_v16 }
  0x82   :  { %678 = vmatprep.subr.bf16.mxu0 %v677_v20 }
  0x85   :  { %680 = vmatpush3.bf16.msra.mxu0 %v677_v20 }
  0x86   :  { %682 = vmatprep.subr.bf16.mxu0 %v681_v22 }
  0x89   :  { %684 = vmatpush3.bf16.msra.mxu0 %v681_v22 }
 0x13f   :  { %v518_v54 = vpop.f32.mrb[0].mxu0 }
 0x140   :  { %v179_v55 = vadd.f32 %v518_v54, %v423_v53  ;;  %v173_v56 = vpop.f32.mrb[1].mxu0 }
 0x141   :  { %v174_v57 = vadd.f32 %v423_v53, %v173_v56 }
 0x142   :  { %v425_v58 = vmul.f32 -1.442695, %v179_v55 }
 0x143   :  { %v424_v59 = vmul.f32 -1.442695, %v174_v57 }
 0x144   :  { %692 = vpow2.f32 %v425_v58 }
 0x145   :  { %694 = vpow2.f32 %v424_v59 }
 0x14e   :  { %v693_v60 = vpop.eup %692 }
 0x14f   :  { %v695_v61 = vpop.eup %694  ;;  %v189_v62 = vadd.f32 1.0, %v693_v60 }
 0x150   :  { %v188_v63 = vadd.f32 1.0, %v695_v61 }
 0x152   :  { %696 = vrcp.f32 %v188_v63 }
 0x153   :  { %698 = vrcp.f32 %v189_v62 }
 0x15c   :  { %v697_v0 = vpop.eup %696 }
 0x15d   :  { %v699_v1 = vpop.eup %698  ;;  %551 = vmatprep.mubr.f32.mxu1 %v697_v0 }
 0x15e   :  { %552 = vmatmul.mubr.f32.vlgmr.msra.gmra.mrb[0].mxu1 %v699_v1 }
 0x231   :  { %v553_v24 = vpop.f32.mrb[0].mxu1 }
 0x232   :  { %v289_v25 = vadd.f32 %v553_v24, %v426_v23  ;;  %v283_v26 = vpop.f32.mrb[1].mxu1 }
 0x233   :  { %v284_v27 = vadd.f32 %v426_v23, %v283_v26 }
 0x234   :  { %v428_v28 = vmul.f32 -1.442695, %v289_v25 }
 0x235   :  { %v427_v29 = vmul.f32 -1.442695, %v284_v27 }
 0x236   :  { %700 = vpow2.f32 %v428_v28 }
 0x237   :  { %702 = vpow2.f32 %v427_v29 }
 0x240   :  { %v701_v30 = vpop.eup %700 }
 0x241   :  { %v703_v31 = vpop.eup %702  ;;  %v299_v32 = vadd.f32 1.0, %v701_v30 }
 0x242   :  { %v298_v33 = vadd.f32 1.0, %v703_v31 }
 0x244   :  { %704 = vrcp.f32 %v298_v33 }
 0x245   :  { %706 = vrcp.f32 %v299_v32 }
 0x24e   :  { %v705_v34 = vpop.eup %704 }
 0x24f   :  { %v707_v35 = vpop.eup %706  ;;  %586 = vmatprep.mubr.f32.mxu0 %v705_v34 }
 0x250   :  { %587 = vmatmul.mubr.f32.vlgmr.msra.gmra.mrb[2].mxu0 %v707_v35 }
 0x323   :  { %v588_v37 = vpop.f32.mrb[2].mxu0 }
 0x324   :  { %v399_v38 = vadd.f32 %v588_v37, %v429_v36  ;;  %v393_v39 = vpop.f32.mrb[3].mxu0 }
 0x325   :  { %v394_v40 = vadd.f32 %v429_v36, %v393_v39 }
 0x326   :  { %403 = vst [vmem:[#allocation10 + $0x8] sm:$0xff] %v399_v38 }
 0x327   :  { %402 = vst [vmem:[#allocation10] sm:$0xff] %v394_v40 }
 0x328   :  { %807 = shalt.err (!%p804_p8)
}
 0x329   :  { %s808_s6 = scalar_lea.hbm %s978_s7, 256 }
 0x32a   :  { %p809_p9 = scmp.ne.s32.totalorder %s978_s7, %s808_s6  ;;  %p812_p10 = scmp.lt.u32.totalorder %s808_s6, %s978_s7 }
 0x32c   :  { %p814_p11 = pnand %p812_p10, %p809_p9 }
 0x32e   :  { %817 = shalt.err (!%p814_p11)
}
 0x32f   :  { %415 = dma.vmem_to_hbm [thread:$0]  %s410_s8, 256, %s978_s7, [#allocation4], %s828_s13, %s828_s13, %s829_s14  }
 0x330   :  { %824 = dma.done.wait [#allocation4], 256  }
 0x331   :  { %825 = vsyncadd [#allocation4], 4294967040 }
 0x332   :  { %419 = vsyncpa [#allocation3], 1 }
 0x333   :  { %420 = vsyncpa [#allocation6], 1 }
 0x334   :  { %421 = vsyncpa [#allocation9], 1 }
 0x335   :  { %422 = vsyncpa [#allocation4], 1 }

</bundles_post_ra>
